<compile_context>
chip_gen: v7x
topology: tpu7x:2x2x1
jax: 0.10.0
libtpu: 0.0.40
codegen_flags: <defaults>
</compile_context>

<pallas_src>
import functools

import jax
import jax.numpy as jnp
from jax.experimental import pallas as pl
from jax.experimental.pallas import tpu as pltpu


def lstm_recurrence_kernel(pre_ref, wh_ref, hs_ref, h_scr, c_scr, *,
                           t_blk, hidden):
    """Runs `t_blk` LSTM timesteps per grid iteration.

    pre_ref : (t_blk, B, 4H)  precomputed x@Wx + b for these timesteps
    wh_ref  : (H, 4H)         recurrent weights (resident across the grid)
    hs_ref  : (t_blk, B, H)   output hidden states
    h_scr/c_scr : (B, H)      state carried across grid steps in VMEM
    """
    @pl.when(pl.program_id(0) == 0)
    def _():
        h_scr[...] = jnp.zeros_like(h_scr)
        c_scr[...] = jnp.zeros_like(c_scr)

    H = hidden
    wh = wh_ref[...]  # hoisted out of the unrolled time loop

    def step(i, carry):
        h, c = carry
        gates = pre_ref[i] + jnp.dot(h, wh,
                                     preferred_element_type=jnp.float32)
        f_gate = jax.nn.sigmoid(gates[:, 0 * H:1 * H])
        i_gate = jax.nn.sigmoid(gates[:, 1 * H:2 * H])
        g_cand = jnp.tanh(gates[:, 2 * H:3 * H])
        o_gate = jax.nn.sigmoid(gates[:, 3 * H:4 * H])
        c_new = c * f_gate + g_cand * i_gate
        h_new = c_new * o_gate          # matches the spec (no tanh on c)
        hs_ref[i] = h_new
        return h_new, c_new

    h_fin, c_fin = jax.lax.fori_loop(
        0, t_blk, step, (h_scr[...], c_scr[...]), unroll=True)
    h_scr[...] = h_fin
    c_scr[...] = c_fin


def _pick_t_block(T, max_blk=16):
    for cand in range(min(T, max_blk), 0, -1):
        if T % cand == 0:
            return cand
    return 1


def lstm_lang_model_forward(input_ids, embed, wx, wh, b, wout, bout,
                            *, t_blk=None):
    """input_ids: (B, T) int32 -> logits (B, T, V), matching PyTorch output."""
    B, T = input_ids.shape
    V, E = embed.shape
    H = wh.shape[0]

    # Embedding lookup (glue).
    tokens = jnp.take(embed, input_ids, axis=0)                 # (B, T, E)

    # Big GEMM #1: input projection + gate bias for all timesteps, emitted
    # directly in time-major order (no separate transpose pass over HBM).
    pre_gates = jnp.einsum('bte,eg->tbg', tokens, wx,
                           preferred_element_type=jnp.float32) + b  # (T,B,4H)

    if t_blk is None:
        t_blk = _pick_t_block(T)
    assert T % t_blk == 0, "T must be divisible by the time block size"
    grid = (T // t_blk,)

    hs_tbh = pl.pallas_call(
        functools.partial(lstm_recurrence_kernel, t_blk=t_blk, hidden=H),
        out_shape=jax.ShapeDtypeStruct((T, B, H), jnp.float32),
        grid_spec=pltpu.PrefetchScalarGridSpec(
            num_scalar_prefetch=0,
            grid=grid,
            in_specs=[
                pl.BlockSpec((t_blk, B, 4 * H), lambda tb: (tb, 0, 0)),  # pre
                pl.BlockSpec((H, 4 * H), lambda tb: (0, 0)),             # Wh
            ],
            out_specs=pl.BlockSpec((t_blk, B, H), lambda tb: (tb, 0, 0)),
            scratch_shapes=[
                pltpu.VMEM((B, H), jnp.float32),   # hidden-state carry
                pltpu.VMEM((B, H), jnp.float32),   # cell-state carry
            ],
        ),
        compiler_params=pltpu.CompilerParams(
            dimension_semantics=("arbitrary",)),   # recurrence -> sequential
    )(pre_gates, wh)

    # Big GEMM #2: one (T*B, H) @ (H, V) vocabulary projection; the
    # (T,B,H)->(B,T,H) transpose is fused into the einsum.
    logits = jnp.einsum('tbh,hv->btv', hs_tbh, wout,
                        preferred_element_type=jnp.float32) + bout
    return logits                                                # (B, T, V)


def reference_forward(input_ids, embed, wx, wh, b, wout, bout, H):
    """Pure-JAX replica of the PyTorch forward for verification."""
    tokens = jnp.take(embed, input_ids, axis=0)    # (B, T, E)
    B, T, _ = tokens.shape
    h = jnp.zeros((B, H), jnp.float32)
    c = jnp.zeros((B, H), jnp.float32)
    outs = []
    for t in range(T):
        x = tokens[:, t, :]
        gates = x @ wx + h @ wh + b
        f = jax.nn.sigmoid(gates[:, 0 * H:1 * H])
        i = jax.nn.sigmoid(gates[:, 1 * H:2 * H])
        g = jnp.tanh(gates[:, 2 * H:3 * H])
        o = jax.nn.sigmoid(gates[:, 3 * H:4 * H])
        c = c * f + g * i
        h = c * o
        outs.append(h)
    hs = jnp.stack(outs, axis=1)                   # (B, T, H)
    return hs @ wout + bout                        # (B, T, V)


if __name__ == "__main__":
    # Small, deterministic synthetic setup.
    EMBED_DIM, VOCAB_SIZE, HIDDEN = 16, 64, 32
    BATCH, SEQ_LEN = 8, 8

    key = jax.random.PRNGKey(0)
    keys = jax.random.split(key, 12)
    scale = 0.1

    # PyTorch-style parameters: each gate Linear has weight (H, E+H), bias (H,).
    embed = (jax.random.normal(keys[0], (VOCAB_SIZE, EMBED_DIM)) * scale
             ).astype(jnp.float32)
    gate_ws = [jax.random.normal(keys[1 + k], (HIDDEN, EMBED_DIM + HIDDEN))
               * scale for k in range(4)]   # order: forget, input, cand, output
    gate_bs = [jax.random.normal(keys[5 + k], (HIDDEN,)) * scale
               for k in range(4)]
    w_out = (jax.random.normal(keys[9], (VOCAB_SIZE, HIDDEN)) * scale
             ).astype(jnp.float32)           # (V, H), PyTorch layout
    b_out = (jax.random.normal(keys[10], (VOCAB_SIZE,)) * scale
             ).astype(jnp.float32)

    # Repack into kernel layout: Wx (E, 4H), Wh (H, 4H), b (1, 4H).
    wx = jnp.concatenate([w[:, :EMBED_DIM].T for w in gate_ws], axis=1
                         ).astype(jnp.float32)
    wh = jnp.concatenate([w[:, EMBED_DIM:].T for w in gate_ws], axis=1
                         ).astype(jnp.float32)
    b = jnp.concatenate(gate_bs, axis=0)[None, :].astype(jnp.float32)
    wout = w_out.T                                   # (H, V)
    bout = b_out[None, :]                            # (1, V)

    input_ids = jax.random.randint(keys[11], (BATCH, SEQ_LEN), 0, VOCAB_SIZE,
                                   dtype=jnp.int32)

    logits = lstm_lang_model_forward(input_ids, embed, wx, wh, b, wout, bout)
    logits = jax.block_until_ready(logits)

    ref = reference_forward(input_ids, embed, wx, wh, b, wout, bout, HIDDEN)
    assert logits.shape == (BATCH, SEQ_LEN, VOCAB_SIZE)
    assert jnp.allclose(logits, ref, rtol=1e-5, atol=1e-5), (
        "Pallas kernel output mismatch vs reference")

    print("KERNEL_OK")
</pallas_src>

<mosaic_0001>
module attributes {stable_mosaic.version = 11 : i64} {
  func.func @lstm_recurrence_kernel(%arg0: i32, %arg1: memref<8x8x128xf32, #tpu.memory_space<vmem>>, %arg2: memref<32x128xf32, #tpu.memory_space<vmem>>, %arg3: memref<8x8x32xf32, #tpu.memory_space<vmem>>, %arg4: memref<8x32xf32, #tpu.memory_space<vmem>>, %arg5: memref<8x32xf32, #tpu.memory_space<vmem>>) attributes {dimension_semantics = [#tpu.dimension_semantics<arbitrary>], iteration_bounds = array<i64: 1>, scalar_prefetch = 0 : i64, scratch_operands = 2 : i64, tpu.core_type = #tpu.core_type<tc>, window_params = [{transform_indices = @transform_0, window_bounds = array<i64: 8, 8, 128>}, {pipeline_mode = #tpu.pipeline_mode<synchronous>, transform_indices = @transform_1, window_bounds = array<i64: 32, 128>}, {transform_indices = @transform_2, window_bounds = array<i64: 8, 8, 32>}]} {
    %c0_i32 = arith.constant 0 : i32
    %0 = arith.cmpi eq, %arg0, %c0_i32 : i32
    %1 = arith.extui %0 : i1 to i32
    %c0_i32_0 = arith.constant 0 : i32
    %2 = arith.cmpi ne, %1, %c0_i32_0 : i32
    scf.if %2 {
      %cst_74 = arith.constant 0.000000e+00 : f32
      %272 = vector.broadcast %cst_74 : f32 to vector<8x32xf32>
      %c0_75 = arith.constant 0 : index
      %c0_76 = arith.constant 0 : index
      %273 = vector.load %arg4[%c0_75, %c0_76] : memref<8x32xf32, #tpu.memory_space<vmem>>, vector<8x32xf32>
      tpu.vector_store %arg4[%c0_75, %c0_76], %272 {strides = array<i32>} : memref<8x32xf32, #tpu.memory_space<vmem>>, vector<8x32xf32>,
      %cst_77 = arith.constant 0.000000e+00 : f32
      %274 = vector.broadcast %cst_77 : f32 to vector<8x32xf32>
      %c0_78 = arith.constant 0 : index
      %c0_79 = arith.constant 0 : index
      %275 = vector.load %arg5[%c0_78, %c0_79] : memref<8x32xf32, #tpu.memory_space<vmem>>, vector<8x32xf32>
      tpu.vector_store %arg5[%c0_78, %c0_79], %274 {strides = array<i32>} : memref<8x32xf32, #tpu.memory_space<vmem>>, vector<8x32xf32>,
    } else {
    }
    %c0 = arith.constant 0 : index
    %c0_1 = arith.constant 0 : index
    %3 = vector.load %arg2[%c0, %c0_1] : memref<32x128xf32, #tpu.memory_space<vmem>>, vector<32x128xf32>
    %c0_2 = arith.constant 0 : index
    %c0_3 = arith.constant 0 : index
    %4 = vector.load %arg4[%c0_2, %c0_3] : memref<8x32xf32, #tpu.memory_space<vmem>>, vector<8x32xf32>
    %c0_4 = arith.constant 0 : index
    %c0_5 = arith.constant 0 : index
    %5 = vector.load %arg5[%c0_4, %c0_5] : memref<8x32xf32, #tpu.memory_space<vmem>>, vector<8x32xf32>
    %c0_i32_6 = arith.constant 0 : i32
    %6 = arith.index_cast %c0_i32_6 : i32 to index
    %c0_7 = arith.constant 0 : index
    %c0_8 = arith.constant 0 : index
    %7 = vector.load %arg1[%6, %c0_7, %c0_8] : memref<8x8x128xf32, #tpu.memory_space<vmem>>, vector<1x8x128xf32>
    %8 = vector.shape_cast %7 : vector<1x8x128xf32> to vector<8x128xf32>
    %cst = arith.constant dense<0.000000e+00> : vector<8x128xf32>
    %9 = tpu.matmul %4, %3, %cst {dimension_numbers = #tpu.dot_dimension_numbers<[1], [0], [0], [1], [0, 0, 1, 1], [], []>} : vector<8x32xf32>, vector<32x128xf32>, vector<8x128xf32> -> vector<8x128xf32>
    %10 = arith.addf %8, %9 : vector<8x128xf32>
    %11 = vector.extract_strided_slice %10 {offsets = [0, 0], sizes = [8, 32], strides = [1, 1]} : vector<8x128xf32> to vector<8x32xf32>
    %12 = arith.negf %11 : vector<8x32xf32>
    %13 = math.exp %12 : vector<8x32xf32>
    %cst_9 = arith.constant 1.000000e+00 : f32
    %14 = vector.broadcast %cst_9 : f32 to vector<8x32xf32>
    %15 = arith.addf %14, %13 : vector<8x32xf32>
    %16 = arith.divf %14, %15 : vector<8x32xf32>
    %17 = vector.extract_strided_slice %10 {offsets = [0, 32], sizes = [8, 32], strides = [1, 1]} : vector<8x128xf32> to vector<8x32xf32>
    %18 = arith.negf %17 : vector<8x32xf32>
    %19 = math.exp %18 : vector<8x32xf32>
    %cst_10 = arith.constant 1.000000e+00 : f32
    %20 = vector.broadcast %cst_10 : f32 to vector<8x32xf32>
    %21 = arith.addf %20, %19 : vector<8x32xf32>
    %22 = arith.divf %20, %21 : vector<8x32xf32>
    %23 = vector.extract_strided_slice %10 {offsets = [0, 64], sizes = [8, 32], strides = [1, 1]} : vector<8x128xf32> to vector<8x32xf32>
    %24 = math.tanh %23 : vector<8x32xf32>
    %25 = vector.extract_strided_slice %10 {offsets = [0, 96], sizes = [8, 32], strides = [1, 1]} : vector<8x128xf32> to vector<8x32xf32>
    %26 = arith.negf %25 : vector<8x32xf32>
    %27 = math.exp %26 : vector<8x32xf32>
    %cst_11 = arith.constant 1.000000e+00 : f32
    %28 = vector.broadcast %cst_11 : f32 to vector<8x32xf32>
    %29 = arith.addf %28, %27 : vector<8x32xf32>
    %30 = arith.divf %28, %29 : vector<8x32xf32>
    %31 = arith.mulf %5, %16 : vector<8x32xf32>
    %32 = arith.mulf %24, %22 : vector<8x32xf32>
    %33 = arith.addf %31, %32 : vector<8x32xf32>
    %34 = arith.mulf %33, %30 : vector<8x32xf32>
    %35 = arith.index_cast %c0_i32_6 : i32 to index
    %c0_12 = arith.constant 0 : index
    %c0_13 = arith.constant 0 : index
    %36 = vector.load %arg3[%35, %c0_12, %c0_13] : memref<8x8x32xf32, #tpu.memory_space<vmem>>, vector<1x8x32xf32>
    %37 = vector.shape_cast %36 : vector<1x8x32xf32> to vector<8x32xf32>
    %38 = vector.shape_cast %34 : vector<8x32xf32> to vector<1x8x32xf32>
    tpu.vector_store %arg3[%35, %c0_12, %c0_13], %38 {strides = array<i32>} : memref<8x8x32xf32, #tpu.memory_space<vmem>>, vector<1x8x32xf32>,
    %c1_i32 = arith.constant 1 : i32
    %39 = arith.index_cast %c1_i32 : i32 to index
    %c0_14 = arith.constant 0 : index
    %c0_15 = arith.constant 0 : index
    %40 = vector.load %arg1[%39, %c0_14, %c0_15] : memref<8x8x128xf32, #tpu.memory_space<vmem>>, vector<1x8x128xf32>
    %41 = vector.shape_cast %40 : vector<1x8x128xf32> to vector<8x128xf32>
    %cst_16 = arith.constant dense<0.000000e+00> : vector<8x128xf32>
    %42 = tpu.matmul %34, %3, %cst_16 {dimension_numbers = #tpu.dot_dimension_numbers<[1], [0], [0], [1], [0, 0, 1, 1], [], []>} : vector<8x32xf32>, vector<32x128xf32>, vector<8x128xf32> -> vector<8x128xf32>
    %43 = arith.addf %41, %42 : vector<8x128xf32>
    %44 = vector.extract_strided_slice %43 {offsets = [0, 0], sizes = [8, 32], strides = [1, 1]} : vector<8x128xf32> to vector<8x32xf32>
    %45 = arith.negf %44 : vector<8x32xf32>
    %46 = math.exp %45 : vector<8x32xf32>
    %cst_17 = arith.constant 1.000000e+00 : f32
    %47 = vector.broadcast %cst_17 : f32 to vector<8x32xf32>
    %48 = arith.addf %47, %46 : vector<8x32xf32>
    %49 = arith.divf %47, %48 : vector<8x32xf32>
    %50 = vector.extract_strided_slice %43 {offsets = [0, 32], sizes = [8, 32], strides = [1, 1]} : vector<8x128xf32> to vector<8x32xf32>
    %51 = arith.negf %50 : vector<8x32xf32>
    %52 = math.exp %51 : vector<8x32xf32>
    %cst_18 = arith.constant 1.000000e+00 : f32
    %53 = vector.broadcast %cst_18 : f32 to vector<8x32xf32>
    %54 = arith.addf %53, %52 : vector<8x32xf32>
    %55 = arith.divf %53, %54 : vector<8x32xf32>
    %56 = vector.extract_strided_slice %43 {offsets = [0, 64], sizes = [8, 32], strides = [1, 1]} : vector<8x128xf32> to vector<8x32xf32>
    %57 = math.tanh %56 : vector<8x32xf32>
    %58 = vector.extract_strided_slice %43 {offsets = [0, 96], sizes = [8, 32], strides = [1, 1]} : vector<8x128xf32> to vector<8x32xf32>
    %59 = arith.negf %58 : vector<8x32xf32>
    %60 = math.exp %59 : vector<8x32xf32>
    %cst_19 = arith.constant 1.000000e+00 : f32
    %61 = vector.broadcast %cst_19 : f32 to vector<8x32xf32>
    %62 = arith.addf %61, %60 : vector<8x32xf32>
    %63 = arith.divf %61, %62 : vector<8x32xf32>
    %64 = arith.mulf %33, %49 : vector<8x32xf32>
    %65 = arith.mulf %57, %55 : vector<8x32xf32>
    %66 = arith.addf %64, %65 : vector<8x32xf32>
    %67 = arith.mulf %66, %63 : vector<8x32xf32>
    %68 = arith.index_cast %c1_i32 : i32 to index
    %c0_20 = arith.constant 0 : index
    %c0_21 = arith.constant 0 : index
    %69 = vector.load %arg3[%68, %c0_20, %c0_21] : memref<8x8x32xf32, #tpu.memory_space<vmem>>, vector<1x8x32xf32>
    %70 = vector.shape_cast %69 : vector<1x8x32xf32> to vector<8x32xf32>
    %71 = vector.shape_cast %67 : vector<8x32xf32> to vector<1x8x32xf32>
    tpu.vector_store %arg3[%68, %c0_20, %c0_21], %71 {strides = array<i32>} : memref<8x8x32xf32, #tpu.memory_space<vmem>>, vector<1x8x32xf32>,
    %c2_i32 = arith.constant 2 : i32
    %72 = arith.index_cast %c2_i32 : i32 to index
    %c0_22 = arith.constant 0 : index
    %c0_23 = arith.constant 0 : index
    %73 = vector.load %arg1[%72, %c0_22, %c0_23] : memref<8x8x128xf32, #tpu.memory_space<vmem>>, vector<1x8x128xf32>
    %74 = vector.shape_cast %73 : vector<1x8x128xf32> to vector<8x128xf32>
    %cst_24 = arith.constant dense<0.000000e+00> : vector<8x128xf32>
    %75 = tpu.matmul %67, %3, %cst_24 {dimension_numbers = #tpu.dot_dimension_numbers<[1], [0], [0], [1], [0, 0, 1, 1], [], []>} : vector<8x32xf32>, vector<32x128xf32>, vector<8x128xf32> -> vector<8x128xf32>
    %76 = arith.addf %74, %75 : vector<8x128xf32>
    %77 = vector.extract_strided_slice %76 {offsets = [0, 0], sizes = [8, 32], strides = [1, 1]} : vector<8x128xf32> to vector<8x32xf32>
    %78 = arith.negf %77 : vector<8x32xf32>
    %79 = math.exp %78 : vector<8x32xf32>
    %cst_25 = arith.constant 1.000000e+00 : f32
    %80 = vector.broadcast %cst_25 : f32 to vector<8x32xf32>
    %81 = arith.addf %80, %79 : vector<8x32xf32>
    %82 = arith.divf %80, %81 : vector<8x32xf32>
    %83 = vector.extract_strided_slice %76 {offsets = [0, 32], sizes = [8, 32], strides = [1, 1]} : vector<8x128xf32> to vector<8x32xf32>
    %84 = arith.negf %83 : vector<8x32xf32>
    %85 = math.exp %84 : vector<8x32xf32>
    %cst_26 = arith.constant 1.000000e+00 : f32
    %86 = vector.broadcast %cst_26 : f32 to vector<8x32xf32>
    %87 = arith.addf %86, %85 : vector<8x32xf32>
    %88 = arith.divf %86, %87 : vector<8x32xf32>
    %89 = vector.extract_strided_slice %76 {offsets = [0, 64], sizes = [8, 32], strides = [1, 1]} : vector<8x128xf32> to vector<8x32xf32>
    %90 = math.tanh %89 : vector<8x32xf32>
    %91 = vector.extract_strided_slice %76 {offsets = [0, 96], sizes = [8, 32], strides = [1, 1]} : vector<8x128xf32> to vector<8x32xf32>
    %92 = arith.negf %91 : vector<8x32xf32>
    %93 = math.exp %92 : vector<8x32xf32>
    %cst_27 = arith.constant 1.000000e+00 : f32
    %94 = vector.broadcast %cst_27 : f32 to vector<8x32xf32>
    %95 = arith.addf %94, %93 : vector<8x32xf32>
    %96 = arith.divf %94, %95 : vector<8x32xf32>
    %97 = arith.mulf %66, %82 : vector<8x32xf32>
    %98 = arith.mulf %90, %88 : vector<8x32xf32>
    %99 = arith.addf %97, %98 : vector<8x32xf32>
    %100 = arith.mulf %99, %96 : vector<8x32xf32>
    %101 = arith.index_cast %c2_i32 : i32 to index
    %c0_28 = arith.constant 0 : index
    %c0_29 = arith.constant 0 : index
    %102 = vector.load %arg3[%101, %c0_28, %c0_29] : memref<8x8x32xf32, #tpu.memory_space<vmem>>, vector<1x8x32xf32>
    %103 = vector.shape_cast %102 : vector<1x8x32xf32> to vector<8x32xf32>
    %104 = vector.shape_cast %100 : vector<8x32xf32> to vector<1x8x32xf32>
    tpu.vector_store %arg3[%101, %c0_28, %c0_29], %104 {strides = array<i32>} : memref<8x8x32xf32, #tpu.memory_space<vmem>>, vector<1x8x32xf32>,
    %c3_i32 = arith.constant 3 : i32
    %105 = arith.index_cast %c3_i32 : i32 to index
    %c0_30 = arith.constant 0 : index
    %c0_31 = arith.constant 0 : index
    %106 = vector.load %arg1[%105, %c0_30, %c0_31] : memref<8x8x128xf32, #tpu.memory_space<vmem>>, vector<1x8x128xf32>
    %107 = vector.shape_cast %106 : vector<1x8x128xf32> to vector<8x128xf32>
    %cst_32 = arith.constant dense<0.000000e+00> : vector<8x128xf32>
    %108 = tpu.matmul %100, %3, %cst_32 {dimension_numbers = #tpu.dot_dimension_numbers<[1], [0], [0], [1], [0, 0, 1, 1], [], []>} : vector<8x32xf32>, vector<32x128xf32>, vector<8x128xf32> -> vector<8x128xf32>
    %109 = arith.addf %107, %108 : vector<8x128xf32>
    %110 = vector.extract_strided_slice %109 {offsets = [0, 0], sizes = [8, 32], strides = [1, 1]} : vector<8x128xf32> to vector<8x32xf32>
    %111 = arith.negf %110 : vector<8x32xf32>
    %112 = math.exp %111 : vector<8x32xf32>
    %cst_33 = arith.constant 1.000000e+00 : f32
    %113 = vector.broadcast %cst_33 : f32 to vector<8x32xf32>
    %114 = arith.addf %113, %112 : vector<8x32xf32>
    %115 = arith.divf %113, %114 : vector<8x32xf32>
    %116 = vector.extract_strided_slice %109 {offsets = [0, 32], sizes = [8, 32], strides = [1, 1]} : vector<8x128xf32> to vector<8x32xf32>
    %117 = arith.negf %116 : vector<8x32xf32>
    %118 = math.exp %117 : vector<8x32xf32>
    %cst_34 = arith.constant 1.000000e+00 : f32
    %119 = vector.broadcast %cst_34 : f32 to vector<8x32xf32>
    %120 = arith.addf %119, %118 : vector<8x32xf32>
    %121 = arith.divf %119, %120 : vector<8x32xf32>
    %122 = vector.extract_strided_slice %109 {offsets = [0, 64], sizes = [8, 32], strides = [1, 1]} : vector<8x128xf32> to vector<8x32xf32>
    %123 = math.tanh %122 : vector<8x32xf32>
    %124 = vector.extract_strided_slice %109 {offsets = [0, 96], sizes = [8, 32], strides = [1, 1]} : vector<8x128xf32> to vector<8x32xf32>
    %125 = arith.negf %124 : vector<8x32xf32>
    %126 = math.exp %125 : vector<8x32xf32>
    %cst_35 = arith.constant 1.000000e+00 : f32
    %127 = vector.broadcast %cst_35 : f32 to vector<8x32xf32>
    %128 = arith.addf %127, %126 : vector<8x32xf32>
    %129 = arith.divf %127, %128 : vector<8x32xf32>
    %130 = arith.mulf %99, %115 : vector<8x32xf32>
    %131 = arith.mulf %123, %121 : vector<8x32xf32>
    %132 = arith.addf %130, %131 : vector<8x32xf32>
    %133 = arith.mulf %132, %129 : vector<8x32xf32>
    %134 = arith.index_cast %c3_i32 : i32 to index
    %c0_36 = arith.constant 0 : index
    %c0_37 = arith.constant 0 : index
    %135 = vector.load %arg3[%134, %c0_36, %c0_37] : memref<8x8x32xf32, #tpu.memory_space<vmem>>, vector<1x8x32xf32>
    %136 = vector.shape_cast %135 : vector<1x8x32xf32> to vector<8x32xf32>
    %137 = vector.shape_cast %133 : vector<8x32xf32> to vector<1x8x32xf32>
    tpu.vector_store %arg3[%134, %c0_36, %c0_37], %137 {strides = array<i32>} : memref<8x8x32xf32, #tpu.memory_space<vmem>>, vector<1x8x32xf32>,
    %c4_i32 = arith.constant 4 : i32
    %138 = arith.index_cast %c4_i32 : i32 to index
    %c0_38 = arith.constant 0 : index
    %c0_39 = arith.constant 0 : index
    %139 = vector.load %arg1[%138, %c0_38, %c0_39] : memref<8x8x128xf32, #tpu.memory_space<vmem>>, vector<1x8x128xf32>
    %140 = vector.shape_cast %139 : vector<1x8x128xf32> to vector<8x128xf32>
    %cst_40 = arith.constant dense<0.000000e+00> : vector<8x128xf32>
    %141 = tpu.matmul %133, %3, %cst_40 {dimension_numbers = #tpu.dot_dimension_numbers<[1], [0], [0], [1], [0, 0, 1, 1], [], []>} : vector<8x32xf32>, vector<32x128xf32>, vector<8x128xf32> -> vector<8x128xf32>
    %142 = arith.addf %140, %141 : vector<8x128xf32>
    %143 = vector.extract_strided_slice %142 {offsets = [0, 0], sizes = [8, 32], strides = [1, 1]} : vector<8x128xf32> to vector<8x32xf32>
    %144 = arith.negf %143 : vector<8x32xf32>
    %145 = math.exp %144 : vector<8x32xf32>
    %cst_41 = arith.constant 1.000000e+00 : f32
    %146 = vector.broadcast %cst_41 : f32 to vector<8x32xf32>
    %147 = arith.addf %146, %145 : vector<8x32xf32>
    %148 = arith.divf %146, %147 : vector<8x32xf32>
    %149 = vector.extract_strided_slice %142 {offsets = [0, 32], sizes = [8, 32], strides = [1, 1]} : vector<8x128xf32> to vector<8x32xf32>
    %150 = arith.negf %149 : vector<8x32xf32>
    %151 = math.exp %150 : vector<8x32xf32>
    %cst_42 = arith.constant 1.000000e+00 : f32
    %152 = vector.broadcast %cst_42 : f32 to vector<8x32xf32>
    %153 = arith.addf %152, %151 : vector<8x32xf32>
    %154 = arith.divf %152, %153 : vector<8x32xf32>
    %155 = vector.extract_strided_slice %142 {offsets = [0, 64], sizes = [8, 32], strides = [1, 1]} : vector<8x128xf32> to vector<8x32xf32>
    %156 = math.tanh %155 : vector<8x32xf32>
    %157 = vector.extract_strided_slice %142 {offsets = [0, 96], sizes = [8, 32], strides = [1, 1]} : vector<8x128xf32> to vector<8x32xf32>
    %158 = arith.negf %157 : vector<8x32xf32>
    %159 = math.exp %158 : vector<8x32xf32>
    %cst_43 = arith.constant 1.000000e+00 : f32
    %160 = vector.broadcast %cst_43 : f32 to vector<8x32xf32>
    %161 = arith.addf %160, %159 : vector<8x32xf32>
    %162 = arith.divf %160, %161 : vector<8x32xf32>
    %163 = arith.mulf %132, %148 : vector<8x32xf32>
    %164 = arith.mulf %156, %154 : vector<8x32xf32>
    %165 = arith.addf %163, %164 : vector<8x32xf32>
    %166 = arith.mulf %165, %162 : vector<8x32xf32>
    %167 = arith.index_cast %c4_i32 : i32 to index
    %c0_44 = arith.constant 0 : index
    %c0_45 = arith.constant 0 : index
    %168 = vector.load %arg3[%167, %c0_44, %c0_45] : memref<8x8x32xf32, #tpu.memory_space<vmem>>, vector<1x8x32xf32>
    %169 = vector.shape_cast %168 : vector<1x8x32xf32> to vector<8x32xf32>
    %170 = vector.shape_cast %166 : vector<8x32xf32> to vector<1x8x32xf32>
    tpu.vector_store %arg3[%167, %c0_44, %c0_45], %170 {strides = array<i32>} : memref<8x8x32xf32, #tpu.memory_space<vmem>>, vector<1x8x32xf32>,
    %c5_i32 = arith.constant 5 : i32
    %171 = arith.index_cast %c5_i32 : i32 to index
    %c0_46 = arith.constant 0 : index
    %c0_47 = arith.constant 0 : index
    %172 = vector.load %arg1[%171, %c0_46, %c0_47] : memref<8x8x128xf32, #tpu.memory_space<vmem>>, vector<1x8x128xf32>
    %173 = vector.shape_cast %172 : vector<1x8x128xf32> to vector<8x128xf32>
    %cst_48 = arith.constant dense<0.000000e+00> : vector<8x128xf32>
    %174 = tpu.matmul %166, %3, %cst_48 {dimension_numbers = #tpu.dot_dimension_numbers<[1], [0], [0], [1], [0, 0, 1, 1], [], []>} : vector<8x32xf32>, vector<32x128xf32>, vector<8x128xf32> -> vector<8x128xf32>
    %175 = arith.addf %173, %174 : vector<8x128xf32>
    %176 = vector.extract_strided_slice %175 {offsets = [0, 0], sizes = [8, 32], strides = [1, 1]} : vector<8x128xf32> to vector<8x32xf32>
    %177 = arith.negf %176 : vector<8x32xf32>
    %178 = math.exp %177 : vector<8x32xf32>
    %cst_49 = arith.constant 1.000000e+00 : f32
    %179 = vector.broadcast %cst_49 : f32 to vector<8x32xf32>
    %180 = arith.addf %179, %178 : vector<8x32xf32>
    %181 = arith.divf %179, %180 : vector<8x32xf32>
    %182 = vector.extract_strided_slice %175 {offsets = [0, 32], sizes = [8, 32], strides = [1, 1]} : vector<8x128xf32> to vector<8x32xf32>
    %183 = arith.negf %182 : vector<8x32xf32>
    %184 = math.exp %183 : vector<8x32xf32>
    %cst_50 = arith.constant 1.000000e+00 : f32
    %185 = vector.broadcast %cst_50 : f32 to vector<8x32xf32>
    %186 = arith.addf %185, %184 : vector<8x32xf32>
    %187 = arith.divf %185, %186 : vector<8x32xf32>
    %188 = vector.extract_strided_slice %175 {offsets = [0, 64], sizes = [8, 32], strides = [1, 1]} : vector<8x128xf32> to vector<8x32xf32>
    %189 = math.tanh %188 : vector<8x32xf32>
    %190 = vector.extract_strided_slice %175 {offsets = [0, 96], sizes = [8, 32], strides = [1, 1]} : vector<8x128xf32> to vector<8x32xf32>
    %191 = arith.negf %190 : vector<8x32xf32>
    %192 = math.exp %191 : vector<8x32xf32>
    %cst_51 = arith.constant 1.000000e+00 : f32
    %193 = vector.broadcast %cst_51 : f32 to vector<8x32xf32>
    %194 = arith.addf %193, %192 : vector<8x32xf32>
    %195 = arith.divf %193, %194 : vector<8x32xf32>
    %196 = arith.mulf %165, %181 : vector<8x32xf32>
    %197 = arith.mulf %189, %187 : vector<8x32xf32>
    %198 = arith.addf %196, %197 : vector<8x32xf32>
    %199 = arith.mulf %198, %195 : vector<8x32xf32>
    %200 = arith.index_cast %c5_i32 : i32 to index
    %c0_52 = arith.constant 0 : index
    %c0_53 = arith.constant 0 : index
    %201 = vector.load %arg3[%200, %c0_52, %c0_53] : memref<8x8x32xf32, #tpu.memory_space<vmem>>, vector<1x8x32xf32>
    %202 = vector.shape_cast %201 : vector<1x8x32xf32> to vector<8x32xf32>
    %203 = vector.shape_cast %199 : vector<8x32xf32> to vector<1x8x32xf32>
    tpu.vector_store %arg3[%200, %c0_52, %c0_53], %203 {strides = array<i32>} : memref<8x8x32xf32, #tpu.memory_space<vmem>>, vector<1x8x32xf32>,
    %c6_i32 = arith.constant 6 : i32
    %204 = arith.index_cast %c6_i32 : i32 to index
    %c0_54 = arith.constant 0 : index
    %c0_55 = arith.constant 0 : index
    %205 = vector.load %arg1[%204, %c0_54, %c0_55] : memref<8x8x128xf32, #tpu.memory_space<vmem>>, vector<1x8x128xf32>
    %206 = vector.shape_cast %205 : vector<1x8x128xf32> to vector<8x128xf32>
    %cst_56 = arith.constant dense<0.000000e+00> : vector<8x128xf32>
    %207 = tpu.matmul %199, %3, %cst_56 {dimension_numbers = #tpu.dot_dimension_numbers<[1], [0], [0], [1], [0, 0, 1, 1], [], []>} : vector<8x32xf32>, vector<32x128xf32>, vector<8x128xf32> -> vector<8x128xf32>
    %208 = arith.addf %206, %207 : vector<8x128xf32>
    %209 = vector.extract_strided_slice %208 {offsets = [0, 0], sizes = [8, 32], strides = [1, 1]} : vector<8x128xf32> to vector<8x32xf32>
    %210 = arith.negf %209 : vector<8x32xf32>
    %211 = math.exp %210 : vector<8x32xf32>
    %cst_57 = arith.constant 1.000000e+00 : f32
    %212 = vector.broadcast %cst_57 : f32 to vector<8x32xf32>
    %213 = arith.addf %212, %211 : vector<8x32xf32>
    %214 = arith.divf %212, %213 : vector<8x32xf32>
    %215 = vector.extract_strided_slice %208 {offsets = [0, 32], sizes = [8, 32], strides = [1, 1]} : vector<8x128xf32> to vector<8x32xf32>
    %216 = arith.negf %215 : vector<8x32xf32>
    %217 = math.exp %216 : vector<8x32xf32>
    %cst_58 = arith.constant 1.000000e+00 : f32
    %218 = vector.broadcast %cst_58 : f32 to vector<8x32xf32>
    %219 = arith.addf %218, %217 : vector<8x32xf32>
    %220 = arith.divf %218, %219 : vector<8x32xf32>
    %221 = vector.extract_strided_slice %208 {offsets = [0, 64], sizes = [8, 32], strides = [1, 1]} : vector<8x128xf32> to vector<8x32xf32>
    %222 = math.tanh %221 : vector<8x32xf32>
    %223 = vector.extract_strided_slice %208 {offsets = [0, 96], sizes = [8, 32], strides = [1, 1]} : vector<8x128xf32> to vector<8x32xf32>
    %224 = arith.negf %223 : vector<8x32xf32>
    %225 = math.exp %224 : vector<8x32xf32>
    %cst_59 = arith.constant 1.000000e+00 : f32
    %226 = vector.broadcast %cst_59 : f32 to vector<8x32xf32>
    %227 = arith.addf %226, %225 : vector<8x32xf32>
    %228 = arith.divf %226, %227 : vector<8x32xf32>
    %229 = arith.mulf %198, %214 : vector<8x32xf32>
    %230 = arith.mulf %222, %220 : vector<8x32xf32>
    %231 = arith.addf %229, %230 : vector<8x32xf32>
    %232 = arith.mulf %231, %228 : vector<8x32xf32>
    %233 = arith.index_cast %c6_i32 : i32 to index
    %c0_60 = arith.constant 0 : index
    %c0_61 = arith.constant 0 : index
    %234 = vector.load %arg3[%233, %c0_60, %c0_61] : memref<8x8x32xf32, #tpu.memory_space<vmem>>, vector<1x8x32xf32>
    %235 = vector.shape_cast %234 : vector<1x8x32xf32> to vector<8x32xf32>
    %236 = vector.shape_cast %232 : vector<8x32xf32> to vector<1x8x32xf32>
    tpu.vector_store %arg3[%233, %c0_60, %c0_61], %236 {strides = array<i32>} : memref<8x8x32xf32, #tpu.memory_space<vmem>>, vector<1x8x32xf32>,
    %c7_i32 = arith.constant 7 : i32
    %237 = arith.index_cast %c7_i32 : i32 to index
    %c0_62 = arith.constant 0 : index
    %c0_63 = arith.constant 0 : index
    %238 = vector.load %arg1[%237, %c0_62, %c0_63] : memref<8x8x128xf32, #tpu.memory_space<vmem>>, vector<1x8x128xf32>
    %239 = vector.shape_cast %238 : vector<1x8x128xf32> to vector<8x128xf32>
    %cst_64 = arith.constant dense<0.000000e+00> : vector<8x128xf32>
    %240 = tpu.matmul %232, %3, %cst_64 {dimension_numbers = #tpu.dot_dimension_numbers<[1], [0], [0], [1], [0, 0, 1, 1], [], []>} : vector<8x32xf32>, vector<32x128xf32>, vector<8x128xf32> -> vector<8x128xf32>
    %241 = arith.addf %239, %240 : vector<8x128xf32>
    %242 = vector.extract_strided_slice %241 {offsets = [0, 0], sizes = [8, 32], strides = [1, 1]} : vector<8x128xf32> to vector<8x32xf32>
    %243 = arith.negf %242 : vector<8x32xf32>
    %244 = math.exp %243 : vector<8x32xf32>
    %cst_65 = arith.constant 1.000000e+00 : f32
    %245 = vector.broadcast %cst_65 : f32 to vector<8x32xf32>
    %246 = arith.addf %245, %244 : vector<8x32xf32>
    %247 = arith.divf %245, %246 : vector<8x32xf32>
    %248 = vector.extract_strided_slice %241 {offsets = [0, 32], sizes = [8, 32], strides = [1, 1]} : vector<8x128xf32> to vector<8x32xf32>
    %249 = arith.negf %248 : vector<8x32xf32>
    %250 = math.exp %249 : vector<8x32xf32>
    %cst_66 = arith.constant 1.000000e+00 : f32
    %251 = vector.broadcast %cst_66 : f32 to vector<8x32xf32>
    %252 = arith.addf %251, %250 : vector<8x32xf32>
    %253 = arith.divf %251, %252 : vector<8x32xf32>
    %254 = vector.extract_strided_slice %241 {offsets = [0, 64], sizes = [8, 32], strides = [1, 1]} : vector<8x128xf32> to vector<8x32xf32>
    %255 = math.tanh %254 : vector<8x32xf32>
    %256 = vector.extract_strided_slice %241 {offsets = [0, 96], sizes = [8, 32], strides = [1, 1]} : vector<8x128xf32> to vector<8x32xf32>
    %257 = arith.negf %256 : vector<8x32xf32>
    %258 = math.exp %257 : vector<8x32xf32>
    %cst_67 = arith.constant 1.000000e+00 : f32
    %259 = vector.broadcast %cst_67 : f32 to vector<8x32xf32>
    %260 = arith.addf %259, %258 : vector<8x32xf32>
    %261 = arith.divf %259, %260 : vector<8x32xf32>
    %262 = arith.mulf %231, %247 : vector<8x32xf32>
    %263 = arith.mulf %255, %253 : vector<8x32xf32>
    %264 = arith.addf %262, %263 : vector<8x32xf32>
    %265 = arith.mulf %264, %261 : vector<8x32xf32>
    %266 = arith.index_cast %c7_i32 : i32 to index
    %c0_68 = arith.constant 0 : index
    %c0_69 = arith.constant 0 : index
    %267 = vector.load %arg3[%266, %c0_68, %c0_69] : memref<8x8x32xf32, #tpu.memory_space<vmem>>, vector<1x8x32xf32>
    %268 = vector.shape_cast %267 : vector<1x8x32xf32> to vector<8x32xf32>
    %269 = vector.shape_cast %265 : vector<8x32xf32> to vector<1x8x32xf32>
    tpu.vector_store %arg3[%266, %c0_68, %c0_69], %269 {strides = array<i32>} : memref<8x8x32xf32, #tpu.memory_space<vmem>>, vector<1x8x32xf32>,
    %c8_i32 = arith.constant 8 : i32
    %c0_70 = arith.constant 0 : index
    %c0_71 = arith.constant 0 : index
    %270 = vector.load %arg4[%c0_70, %c0_71] : memref<8x32xf32, #tpu.memory_space<vmem>>, vector<8x32xf32>
    tpu.vector_store %arg4[%c0_70, %c0_71], %265 {strides = array<i32>} : memref<8x32xf32, #tpu.memory_space<vmem>>, vector<8x32xf32>,
    %c0_72 = arith.constant 0 : index
    %c0_73 = arith.constant 0 : index
    %271 = vector.load %arg5[%c0_72, %c0_73] : memref<8x32xf32, #tpu.memory_space<vmem>>, vector<8x32xf32>
    tpu.vector_store %arg5[%c0_72, %c0_73], %264 {strides = array<i32>} : memref<8x32xf32, #tpu.memory_space<vmem>>, vector<8x32xf32>,
    return
  }
  func.func @transform_0(%arg0: i32) -> (i32, i32, i32) {
    %c0_i32 = arith.constant 0 : i32
    %c0_i32_0 = arith.constant 0 : i32
    %c0_i32_1 = arith.constant 0 : i32
    return %arg0, %c0_i32, %c0_i32_0 : i32, i32, i32
  }
  func.func @transform_1(%arg0: i32) -> (i32, i32) {
    %c0_i32 = arith.constant 0 : i32
    %c0_i32_0 = arith.constant 0 : i32
    %c0_i32_1 = arith.constant 0 : i32
    return %c0_i32, %c0_i32_0 : i32, i32
  }
  func.func @transform_2(%arg0: i32) -> (i32, i32, i32) {
    %c0_i32 = arith.constant 0 : i32
    %c0_i32_0 = arith.constant 0 : i32
    %c0_i32_1 = arith.constant 0 : i32
    return %arg0, %c0_i32, %c0_i32_0 : i32, i32, i32
  }
}

</mosaic_0001>

<bundles_post_ra>
// kernel: tpu_custom_call.1
= control target key start
LH: loop header
LB: loop body
LE: loop exit
PB: predicated region body
PF: predicated region fallthrough
CT: control target
= control target key end

     0   :  { %7 = vsyncpa [#allocation5], 0  ;;  %s1330_s0 = inlined_call_operand.hbm [shape: f32[8,8,128], index: 0, kind: input, shape index: {}]   ;;  %s1331_s1 = inlined_call_operand.hbm [shape: f32[32,128], index: 1, kind: input, shape index: {}]   ;;  %s1332_s2 = inlined_call_operand.hbm [shape: f32[8,8,32], index: 2, kind: output, shape index: {}]  }
   0x1   :  { %8 = vsyncpa [#allocation8], 0 }
   0x2   :  { %9 = vsyncpa [#allocation6], 0  ;;  %s1170_s9 = smov [#allocation4]   ;;  %s1098_s13 = scalar_lea.hbm %s1330_s0, 1024 }
   0x3   :  { %s15_s10 = sshll.u32 %s1170_s9, 4  ;;  %p1099_p0 = scmp.ne.s32.totalorder %s1330_s0, %s1098_s13  ;;  %s16_s10 = int_to_ptr.vmem [resolvable:$true] %s15_s10 }
   0x4   :  { %p1102_p1 = scmp.lt.u32.totalorder %s1098_s13, %s1330_s0 }
   0x6   :  { %p1104_p2 = pnand %p1102_p1, %p1099_p0 }
   0x8   :  { %1107 = shalt.err (!%p1104_p2)
}
   0x9   :  { %s1108_s18 = scalar_lea.vmem %s16_s10, 1024  ;;  %p1113_p4 = scmp.lt.s32.totalorder %s16_s10, %s16_s10 }
   0xa   :  { %p1109_p3 = scmp.ne.s32.totalorder %s16_s10, %s1108_s18  ;;  %p1114_p5 = scmp.lt.s32.totalorder %s1108_s18, %s1108_s18 }
   0xc   :  { %p1115_p6 = por %p1114_p5, %p1113_p4 }
   0xe   :  { %p1116_p7 = pnand %p1115_p6, %p1109_p3 }
  0x10   :  { %1119 = shalt.err (!%p1116_p7)
}
  0x11   :  { %s1171_s19 = smov 128   ;;  %s1172_s20 = smov 8  }
  0x12   :  { %21 = dma.hbm_to_vmem [thread:$0]  %s1330_s0, 1024, %s16_s10, [#allocation5], %s1171_s19, %s1171_s19, %s1172_s20  }
  0x13   :  { %s1173_s23 = smov [#allocation7]   ;;  %s1120_s27 = scalar_lea.hbm %s1331_s1, 512 }
  0x14   :  { %s27_s24 = sshll.u32 %s1173_s23, 4  ;;  %p1121_p8 = scmp.ne.s32.totalorder %s1331_s1, %s1120_s27  ;;  %s28_s24 = int_to_ptr.vmem [resolvable:$true] %s27_s24 }
  0x15   :  { %p1124_p9 = scmp.lt.u32.totalorder %s1120_s27, %s1331_s1 }
  0x17   :  { %p1126_p10 = pnand %p1124_p9, %p1121_p8 }
  0x19   :  { %1129 = shalt.err (!%p1126_p10)
}
  0x1a   :  { %s1130_s4 = scalar_lea.vmem %s28_s24, 512  ;;  %p1135_p12 = scmp.lt.s32.totalorder %s28_s24, %s28_s24 }
  0x1b   :  { %p1131_p11 = scmp.ne.s32.totalorder %s28_s24, %s1130_s4  ;;  %p1136_p13 = scmp.lt.s32.totalorder %s1130_s4, %s1130_s4 }
  0x1d   :  { %p1137_p0 = por %p1136_p13, %p1135_p12 }
  0x1f   :  { %p1138_p1 = pnand %p1137_p0, %p1131_p11 }
  0x21   :  { %1141 = shalt.err (!%p1138_p1)
}
  0x22   :  { %33 = dma.hbm_to_vmem [thread:$0]  %s1331_s1, 512, %s28_s24, [#allocation8], %s1171_s19, %s1171_s19, %s1172_s20  }
  0x23   :  { %1164 = dma.done.wait [#allocation5], 1024  }
  0x24   :  { %1165 = vsyncadd [#allocation5], 4294966272 }
  0x25   :  { %1166 = dma.done.wait [#allocation8], 512  }
  0x26   :  { %1167 = vsyncadd [#allocation8], 4294966784  ;;  %vm44_vm0 = vcmask 261120   ;;  %v1174_v0 = vmov 0.0|0.0   ;;  %vm1175_vm1 = vmmov 0   ;;  %v1176_v1 = vmov 0.0  }
  0x27   :  { %992 = vmatprep.subr.bf16.mxu0 %v1174_v0  ;;  %912 = vmatprep.mubr.msk.f32.mxu0 %vm1175_vm1, %v1176_v1  ;;  %45 = vst.msk [vmem:[#allocation2] sm:$0xff] %vm44_vm0, %v1176_v1  ;;  %46 = vst.msk [vmem:[#allocation3] sm:$0xff] %vm44_vm0, %v1176_v1  ;;  %v47_v2 = vld [vmem:[#allocation7] sm:$0xff]  ;;  %v48_v3 = vld [vmem:[#allocation7 + $0x8] sm:$0xff]  ;;  %s1177_s1 = smov 32   ;;  %s1178_s6 = smov 64  }
  0x28   :  { %998 = vmatprep.subr.bf16.mxu1 %v1174_v0  ;;  %923 = vmatprep.mubr.msk.f32.mxu1 %vm1175_vm1, %v1176_v1  ;;  %v49_v4 = vld [vmem:[#allocation7 + $0x10] sm:$0xff]  ;;  %v1235_v5 = vpack.c.bf16 %v48_v3, %v47_v2  ;;  %v50_v6 = vld [vmem:[#allocation7 + $0x18] sm:$0xff]  ;;  %v53_v9 = vld [vmem:[#allocation4] sm:$0xff]  ;;  %s1179_s7 = smov [#allocation9]  }
  0x29   :  { %v1238_v7 = vpack.c.bf16 %v50_v6, %v49_v4  ;;  %v150_v25 = vld [vmem:[#allocation4 + $0x8] sm:$0xff]  ;;  %v247_v40 = vld [vmem:[#allocation4 + $0x10] sm:$0xff]  ;;  %v344_v55 = vld [vmem:[#allocation4 + $0x18] sm:$0xff]  ;;  %s835_s8 = sshll.u32 %s1179_s7, 4  ;;  %s836_s8 = int_to_ptr.vmem [resolvable:$true] %s835_s8 }
  0x2a   :  { %994 = vmatpush3.bf16.msra.mxu0 %v1235_v5  ;;  %1000 = vmatpush3.bf16.msra.mxu1 %v1235_v5  ;;  %s1142_s9 = scalar_lea.vmem %s836_s8, 1024  ;;  %p1147_p3 = scmp.lt.s32.totalorder %s836_s8, %s836_s8 }
  0x2b   :  { %995 = vmatprep.subr.bf16.mxu0 %v1174_v0  ;;  %1001 = vmatprep.subr.bf16.mxu1 %v1174_v0  ;;  %p1143_p2 = scmp.ne.s32.totalorder %s836_s8, %s1142_s9  ;;  %p1148_p4 = scmp.lt.s32.totalorder %s1142_s9, %s1142_s9 }
  0x2d   :  { %p1149_p5 = por %p1148_p4, %p1147_p3 }
  0x2e   :  { %997 = vmatpush3.bf16.msra.mxu0 %v1238_v7  ;;  %v51_v8 = vld [vmem:[#allocation2] sm:$0xff]  ;;  %1003 = vmatpush3.bf16.msra.mxu1 %v1238_v7  ;;  %v52_v20 = vld [vmem:[#allocation3] sm:$0xff] }
  0x2f   :  { %1004 = vmatprep.subr.bf16.mxu0 %v1174_v0  ;;  %1010 = vmatprep.subr.bf16.mxu1 %v1174_v0  ;;  %p1150_p6 = pnand %p1149_p5, %p1143_p2 }
  0x31   :  { %913 = vmatmul.mubr.msk.f32.vlgmr.msra.gmra.mrb[0].mxu0 %vm44_vm0, %v51_v8 }
  0x32   :  { %1006 = vmatpush3.bf16.msra.mxu0 %v1235_v5  ;;  %934 = vmatprep.mubr.msk.f32.mxu0 %vm1175_vm1, %v1176_v1 }
  0x33   :  { %1007 = vmatprep.subr.bf16.mxu0 %v1174_v0 }
  0x36   :  { %1009 = vmatpush3.bf16.msra.mxu0 %v1238_v7 }
  0x37   :  { %1016 = vmatprep.subr.bf16.mxu0 %v1174_v0 }
 0x104   :  { %v124_v10 = vpop.f32.mrb[0].mxu0 }
 0x105   :  { %v128_v11 = vadd.f32 %v124_v10, %v53_v9  ;;  %v914_v12 = vpop.f32.mrb[1].mxu0  ;;  %v441_v10 = vld [vmem:[#allocation4 + $0x20] sm:$0xff] }
 0x107   :  { %v849_v13 = vmul.f32 -1.442695, %v128_v11 }
 0x109   :  { %1050 = vpow2.f32 %v849_v13 }
 0x113   :  { %v1051_v14 = vpop.eup %1050 }
 0x114   :  { %v132_v15 = vadd.f32 1.0, %v1051_v14 }
 0x116   :  { %1052 = vrcp.f32 %v132_v15 }
 0x117   :  { %1054 = vtanh.f32 %v128_v11 }
 0x120   :  { %v1053_v16 = vpop.eup %1052 }
 0x121   :  { %138 = vrot.lane.b32.xlu0 %v1053_v16, %s1177_s1  ;;  %v1055_v17 = vpop.eup %1054  ;;  %v136_v21 = vmul.f32 %v1053_v16, %v52_v20 }
 0x193   :  { %v139_v18 = vpop.permute.xlu0 %138 }
 0x194   :  { %v141_v19 = vmul.f32 %v1055_v17, %v139_v18 }
 0x196   :  { %143 = vrot.lane.b32.xlu0 %v141_v19, %s1178_s6 }
 0x208   :  { %v144_v22 = vpop.permute.xlu0 %143 }
 0x209   :  { %v146_v23 = vadd.f32 %v144_v22, %v136_v21 }
 0x20b   :  { %v147_v24 = vmul.f32 %v146_v23, %v139_v18 }
 0x20d   :  { %148 = vst.msk [vmem:[#allocation9] sm:$0xff] %vm44_vm0, %v147_v24  ;;  %924 = vmatmul.mubr.msk.f32.vlgmr.msra.gmra.mrb[0].mxu1 %vm44_vm0, %v147_v24 }
 0x20e   :  { %1012 = vmatpush3.bf16.msra.mxu1 %v1235_v5  ;;  %945 = vmatprep.mubr.msk.f32.mxu1 %vm1175_vm1, %v1176_v1 }
 0x20f   :  { %1013 = vmatprep.subr.bf16.mxu1 %v1174_v0 }
 0x212   :  { %1015 = vmatpush3.bf16.msra.mxu1 %v1238_v7 }
 0x213   :  { %1022 = vmatprep.subr.bf16.mxu1 %v1174_v0 }
 0x2e0   :  { %v220_v26 = vpop.f32.mrb[0].mxu1 }
 0x2e1   :  { %v224_v27 = vadd.f32 %v220_v26, %v150_v25  ;;  %v925_v28 = vpop.f32.mrb[1].mxu1  ;;  %v538_v25 = vld [vmem:[#allocation4 + $0x28] sm:$0xff] }
 0x2e3   :  { %v851_v29 = vmul.f32 -1.442695, %v224_v27 }
 0x2e5   :  { %1056 = vpow2.f32 %v851_v29 }
 0x2ef   :  { %v1057_v30 = vpop.eup %1056 }
 0x2f0   :  { %v228_v31 = vadd.f32 1.0, %v1057_v30 }
 0x2f2   :  { %1058 = vrcp.f32 %v228_v31 }
 0x2f3   :  { %1060 = vtanh.f32 %v224_v27 }
 0x2fc   :  { %v1059_v32 = vpop.eup %1058 }
 0x2fd   :  { %234 = vrot.lane.b32.xlu1 %v1059_v32, %s1177_s1  ;;  %v1061_v33 = vpop.eup %1060  ;;  %v232_v36 = vmul.f32 %v1059_v32, %v146_v23 }
 0x36f   :  { %v235_v34 = vpop.permute.xlu1 %234 }
 0x370   :  { %v237_v35 = vmul.f32 %v1061_v33, %v235_v34 }
 0x372   :  { %239 = vrot.lane.b32.xlu1 %v237_v35, %s1178_s6 }
 0x3e4   :  { %v240_v37 = vpop.permute.xlu1 %239 }
 0x3e5   :  { %v242_v38 = vadd.f32 %v240_v37, %v232_v36  ;;  %v635_v36 = vld [vmem:[#allocation4 + $0x30] sm:$0xff] }
 0x3e7   :  { %v243_v39 = vmul.f32 %v242_v38, %v235_v34 }
 0x3e9   :  { %245 = vst.msk [vmem:[#allocation9 + $0x8] sm:$0xff] %vm44_vm0, %v243_v39  ;;  %935 = vmatmul.mubr.msk.f32.vlgmr.msra.gmra.mrb[2].mxu0 %vm44_vm0, %v243_v39 }
 0x3ea   :  { %1018 = vmatpush3.bf16.msra.mxu0 %v1235_v5  ;;  %956 = vmatprep.mubr.msk.f32.mxu0 %vm1175_vm1, %v1176_v1 }
 0x3eb   :  { %1019 = vmatprep.subr.bf16.mxu0 %v1174_v0 }
 0x3ee   :  { %1021 = vmatpush3.bf16.msra.mxu0 %v1238_v7 }
 0x3ef   :  { %1028 = vmatprep.subr.bf16.mxu0 %v1174_v0 }
 0x4bc   :  { %v317_v41 = vpop.f32.mrb[2].mxu0 }
 0x4bd   :  { %v321_v42 = vadd.f32 %v317_v41, %v247_v40  ;;  %v936_v43 = vpop.f32.mrb[3].mxu0 }
 0x4bf   :  { %v853_v44 = vmul.f32 -1.442695, %v321_v42 }
 0x4c1   :  { %1062 = vpow2.f32 %v853_v44 }
 0x4cb   :  { %v1063_v45 = vpop.eup %1062 }
 0x4cc   :  { %v325_v46 = vadd.f32 1.0, %v1063_v45 }
 0x4ce   :  { %1064 = vrcp.f32 %v325_v46 }
 0x4cf   :  { %1066 = vtanh.f32 %v321_v42 }
 0x4d8   :  { %v1065_v47 = vpop.eup %1064 }
 0x4d9   :  { %331 = vrot.lane.b32.xlu0 %v1065_v47, %s1177_s1  ;;  %v1067_v48 = vpop.eup %1066  ;;  %v329_v51 = vmul.f32 %v1065_v47, %v242_v38 }
 0x54b   :  { %v332_v49 = vpop.permute.xlu0 %331 }
 0x54c   :  { %v334_v50 = vmul.f32 %v1067_v48, %v332_v49 }
 0x54e   :  { %336 = vrot.lane.b32.xlu1 %v334_v50, %s1178_s6 }
 0x5c0   :  { %v337_v52 = vpop.permute.xlu1 %336 }
 0x5c1   :  { %v339_v53 = vadd.f32 %v337_v52, %v329_v51  ;;  %v732_v51 = vld [vmem:[#allocation4 + $0x38] sm:$0xff] }
 0x5c3   :  { %v340_v54 = vmul.f32 %v339_v53, %v332_v49 }
 0x5c5   :  { %342 = vst.msk [vmem:[#allocation9 + $0x10] sm:$0xff] %vm44_vm0, %v340_v54  ;;  %946 = vmatmul.mubr.msk.f32.vlgmr.msra.gmra.mrb[2].mxu1 %vm44_vm0, %v340_v54 }
 0x5c6   :  { %1024 = vmatpush3.bf16.msra.mxu1 %v1235_v5  ;;  %967 = vmatprep.mubr.msk.f32.mxu1 %vm1175_vm1, %v1176_v1 }
 0x5c7   :  { %1025 = vmatprep.subr.bf16.mxu1 %v1174_v0 }
 0x5ca   :  { %1027 = vmatpush3.bf16.msra.mxu1 %v1238_v7 }
 0x5cb   :  { %1034 = vmatprep.subr.bf16.mxu1 %v1174_v0 }
 0x698   :  { %v414_v56 = vpop.f32.mrb[2].mxu1 }
 0x699   :  { %v418_v57 = vadd.f32 %v414_v56, %v344_v55  ;;  %v947_v58 = vpop.f32.mrb[3].mxu1 }
 0x69b   :  { %v855_v59 = vmul.f32 -1.442695, %v418_v57 }
 0x69d   :  { %1068 = vpow2.f32 %v855_v59 }
 0x6a7   :  { %v1069_v60 = vpop.eup %1068 }
 0x6a8   :  { %v422_v61 = vadd.f32 1.0, %v1069_v60 }
 0x6aa   :  { %1070 = vrcp.f32 %v422_v61 }
 0x6ab   :  { %1072 = vtanh.f32 %v418_v57 }
 0x6b4   :  { %v1071_v62 = vpop.eup %1070 }
 0x6b5   :  { %428 = vrot.lane.b32.xlu0 %v1071_v62, %s1177_s1  ;;  %v1073_v63 = vpop.eup %1072  ;;  %v426_v4 = vmul.f32 %v1071_v62, %v339_v53 }
 0x727   :  { %v429_v2 = vpop.permute.xlu0 %428 }
 0x728   :  { %v431_v3 = vmul.f32 %v1073_v63, %v429_v2 }
 0x72a   :  { %433 = vrot.lane.b32.xlu1 %v431_v3, %s1178_s6 }
 0x79c   :  { %v434_v6 = vpop.permute.xlu1 %433 }
 0x79d   :  { %v436_v8 = vadd.f32 %v434_v6, %v426_v4 }
 0x79f   :  { %v437_v9 = vmul.f32 %v436_v8, %v429_v2 }
 0x7a1   :  { %439 = vst.msk [vmem:[#allocation9 + $0x18] sm:$0xff] %vm44_vm0, %v437_v9  ;;  %957 = vmatmul.mubr.msk.f32.vlgmr.msra.gmra.mrb[4].mxu0 %vm44_vm0, %v437_v9 }
 0x7a2   :  { %1030 = vmatpush3.bf16.msra.mxu0 %v1235_v5  ;;  %978 = vmatprep.mubr.msk.f32.mxu0 %vm1175_vm1, %v1176_v1 }
 0x7a3   :  { %1031 = vmatprep.subr.bf16.mxu0 %v1174_v0 }
 0x7a6   :  { %1033 = vmatpush3.bf16.msra.mxu0 %v1238_v7 }
 0x874   :  { %v511_v11 = vpop.f32.mrb[4].mxu0 }
 0x875   :  { %v515_v12 = vadd.f32 %v511_v11, %v441_v10  ;;  %v958_v13 = vpop.f32.mrb[5].mxu0 }
 0x877   :  { %v857_v14 = vmul.f32 -1.442695, %v515_v12 }
 0x879   :  { %1074 = vpow2.f32 %v857_v14 }
 0x883   :  { %v1075_v15 = vpop.eup %1074 }
 0x884   :  { %v519_v16 = vadd.f32 1.0, %v1075_v15 }
 0x886   :  { %1076 = vrcp.f32 %v519_v16 }
 0x887   :  { %1078 = vtanh.f32 %v515_v12 }
 0x890   :  { %v1077_v17 = vpop.eup %1076 }
 0x891   :  { %525 = vrot.lane.b32.xlu0 %v1077_v17, %s1177_s1  ;;  %v1079_v18 = vpop.eup %1078  ;;  %v523_v21 = vmul.f32 %v1077_v17, %v436_v8 }
 0x903   :  { %v526_v19 = vpop.permute.xlu0 %525 }
 0x904   :  { %v528_v20 = vmul.f32 %v1079_v18, %v526_v19 }
 0x906   :  { %530 = vrot.lane.b32.xlu1 %v528_v20, %s1178_s6 }
 0x978   :  { %v531_v22 = vpop.permute.xlu1 %530 }
 0x979   :  { %v533_v23 = vadd.f32 %v531_v22, %v523_v21 }
 0x97b   :  { %v534_v24 = vmul.f32 %v533_v23, %v526_v19 }
 0x97d   :  { %536 = vst.msk [vmem:[#allocation9 + $0x20] sm:$0xff] %vm44_vm0, %v534_v24  ;;  %968 = vmatmul.mubr.msk.f32.vlgmr.msra.gmra.mrb[4].mxu1 %vm44_vm0, %v534_v24 }
 0x97e   :  { %1036 = vmatpush3.bf16.msra.mxu1 %v1235_v5  ;;  %989 = vmatprep.mubr.msk.f32.mxu1 %vm1175_vm1, %v1176_v1 }
 0x97f   :  { %1037 = vmatprep.subr.bf16.mxu1 %v1174_v0 }
 0x982   :  { %1039 = vmatpush3.bf16.msra.mxu1 %v1238_v7 }
 0xa50   :  { %v608_v26 = vpop.f32.mrb[4].mxu1 }
 0xa51   :  { %v612_v27 = vadd.f32 %v608_v26, %v538_v25  ;;  %v969_v28 = vpop.f32.mrb[5].mxu1 }
 0xa53   :  { %v859_v29 = vmul.f32 -1.442695, %v612_v27 }
 0xa55   :  { %1080 = vpow2.f32 %v859_v29 }
 0xa5f   :  { %v1081_v30 = vpop.eup %1080 }
 0xa60   :  { %v616_v31 = vadd.f32 1.0, %v1081_v30 }
 0xa62   :  { %1082 = vrcp.f32 %v616_v31 }
 0xa63   :  { %1084 = vtanh.f32 %v612_v27 }
 0xa6c   :  { %v1083_v32 = vpop.eup %1082 }
 0xa6d   :  { %622 = vrot.lane.b32.xlu0 %v1083_v32, %s1177_s1  ;;  %v1085_v5 = vpop.eup %1084  ;;  %v620_v0 = vmul.f32 %v1083_v32, %v533_v23 }
 0xadf   :  { %v623_v33 = vpop.permute.xlu0 %622 }
 0xae0   :  { %v625_v1 = vmul.f32 %v1085_v5, %v623_v33 }
 0xae2   :  { %627 = vrot.lane.b32.xlu1 %v625_v1, %s1178_s6 }
 0xb54   :  { %v628_v7 = vpop.permute.xlu1 %627 }
 0xb55   :  { %v630_v34 = vadd.f32 %v628_v7, %v620_v0 }
 0xb57   :  { %v631_v35 = vmul.f32 %v630_v34, %v623_v33 }
 0xb59   :  { %633 = vst.msk [vmem:[#allocation9 + $0x28] sm:$0xff] %vm44_vm0, %v631_v35  ;;  %979 = vmatmul.mubr.msk.f32.vlgmr.msra.gmra.mrb[6].mxu0 %vm44_vm0, %v631_v35 }
 0xc2c   :  { %v705_v37 = vpop.f32.mrb[6].mxu0 }
 0xc2d   :  { %v709_v38 = vadd.f32 %v705_v37, %v635_v36  ;;  %v980_v39 = vpop.f32.mrb[7].mxu0 }
 0xc2f   :  { %v861_v40 = vmul.f32 -1.442695, %v709_v38 }
 0xc31   :  { %1086 = vpow2.f32 %v861_v40 }
 0xc3b   :  { %v1087_v41 = vpop.eup %1086 }
 0xc3c   :  { %v713_v42 = vadd.f32 1.0, %v1087_v41 }
 0xc3e   :  { %1088 = vrcp.f32 %v713_v42 }
 0xc3f   :  { %1090 = vtanh.f32 %v709_v38 }
 0xc48   :  { %v1089_v43 = vpop.eup %1088 }
 0xc49   :  { %719 = vrot.lane.b32.xlu0 %v1089_v43, %s1177_s1  ;;  %v1091_v44 = vpop.eup %1090  ;;  %v717_v47 = vmul.f32 %v1089_v43, %v630_v34 }
 0xcbb   :  { %v720_v45 = vpop.permute.xlu0 %719 }
 0xcbc   :  { %v722_v46 = vmul.f32 %v1091_v44, %v720_v45 }
 0xcbe   :  { %724 = vrot.lane.b32.xlu1 %v722_v46, %s1178_s6 }
 0xd30   :  { %v725_v48 = vpop.permute.xlu1 %724 }
 0xd31   :  { %v727_v49 = vadd.f32 %v725_v48, %v717_v47 }
 0xd33   :  { %v728_v50 = vmul.f32 %v727_v49, %v720_v45 }
 0xd35   :  { %730 = vst.msk [vmem:[#allocation9 + $0x30] sm:$0xff] %vm44_vm0, %v728_v50  ;;  %990 = vmatmul.mubr.msk.f32.vlgmr.msra.gmra.mrb[6].mxu1 %vm44_vm0, %v728_v50 }
 0xe08   :  { %v802_v52 = vpop.f32.mrb[6].mxu1 }
 0xe09   :  { %v806_v53 = vadd.f32 %v802_v52, %v732_v51  ;;  %v991_v54 = vpop.f32.mrb[7].mxu1 }
 0xe0b   :  { %v863_v55 = vmul.f32 -1.442695, %v806_v53 }
 0xe0d   :  { %1092 = vpow2.f32 %v863_v55 }
 0xe17   :  { %v1093_v56 = vpop.eup %1092 }
 0xe18   :  { %v810_v57 = vadd.f32 1.0, %v1093_v56 }
 0xe1a   :  { %1094 = vrcp.f32 %v810_v57 }
 0xe1b   :  { %1096 = vtanh.f32 %v806_v53 }
 0xe24   :  { %v1095_v58 = vpop.eup %1094 }
 0xe25   :  { %816 = vrot.lane.b32.xlu0 %v1095_v58, %s1177_s1  ;;  %v1097_v59 = vpop.eup %1096  ;;  %v814_v62 = vmul.f32 %v1095_v58, %v727_v49 }
 0xe97   :  { %v817_v60 = vpop.permute.xlu0 %816 }
 0xe98   :  { %v819_v61 = vmul.f32 %v1097_v59, %v817_v60 }
 0xe9a   :  { %821 = vrot.lane.b32.xlu1 %v819_v61, %s1178_s6 }
 0xf0c   :  { %v822_v63 = vpop.permute.xlu1 %821 }
 0xf0d   :  { %v824_v2 = vadd.f32 %v822_v63, %v814_v62 }
 0xf0f   :  { %v825_v3 = vmul.f32 %v824_v2, %v817_v60  ;;  %829 = vst.msk [vmem:[#allocation3] sm:$0xff] %vm44_vm0, %v824_v2 }
 0xf11   :  { %827 = vst.msk [vmem:[#allocation9 + $0x38] sm:$0xff] %vm44_vm0, %v825_v3  ;;  %828 = vst.msk [vmem:[#allocation2] sm:$0xff] %vm44_vm0, %v825_v3 }
 0xf12   :  { %1153 = shalt.err (!%p1150_p6)
}
 0xf13   :  { %s1154_s12 = scalar_lea.hbm %s1332_s2, 1024 }
 0xf14   :  { %p1155_p7 = scmp.ne.s32.totalorder %s1332_s2, %s1154_s12  ;;  %p1158_p8 = scmp.lt.u32.totalorder %s1154_s12, %s1332_s2 }
 0xf16   :  { %p1160_p9 = pnand %p1158_p8, %p1155_p7 }
 0xf18   :  { %1163 = shalt.err (!%p1160_p9)
}
 0xf19   :  { %841 = dma.vmem_to_hbm [thread:$0]  %s836_s8, 1024, %s1332_s2, [#allocation6], %s1171_s19, %s1171_s19, %s1172_s20  }
 0xf1a   :  { %1168 = dma.done.wait [#allocation6], 1024  }
 0xf1b   :  { %1169 = vsyncadd [#allocation6], 4294966272 }
 0xf1c   :  { %845 = vsyncpa [#allocation5], 1 }
 0xf1d   :  { %846 = vsyncpa [#allocation8], 1 }
 0xf1e   :  { %847 = vsyncpa [#allocation6], 1 }

</bundles_post_ra>
